<compile_context>
chip_gen: v6e
topology: v6e:2x2x1
jax: 0.10.0
libtpu: 0.0.40
codegen_flags: <defaults>
</compile_context>

<pallas_src>
import numpy as np
import jax
import jax.numpy as jnp
from jax.experimental import pallas as pl
from jax.experimental.pallas import tpu as pltpu


# ---------------------------------------------------------------------------
# Constant selection matrix:  row o has a single 1.0 at the flat input index of
# the (2*oi, 2*oj) source pixel -> applying it reproduces x[:, :, ::2, ::2].
# ---------------------------------------------------------------------------
def _selection_matrix_T(h, w):
    h_out, w_out = (h + 1) // 2, (w + 1) // 2
    s_in, s_out = h * w, h_out * w_out
    sel = np.zeros((s_out, s_in), np.float32)
    for oi in range(h_out):
        for oj in range(w_out):
            sel[oi * w_out + oj, (2 * oi) * w + (2 * oj)] = 1.0
    return jnp.asarray(sel)                      # (S_out, S_in) f32, 0/1


# ---------------------------------------------------------------------------
# Kernel: one batch sample per grid step; everything stays in VMEM/vregs.
# ---------------------------------------------------------------------------
def _make_lambda_kernel(c_in, pad):
    def kernel(x_ref, selT_ref, out_ref):
        x = x_ref[0]                             # (C, S_in)   f32
        selT = selT_ref[...]                     # (S_out, S_in) f32, 0/1
        # Exact stride-2 spatial subsample: each output column has exactly one
        # source pixel with coefficient 1.0, so an elementwise multiply and a
        # lane-dim reduction give bit-equivalent copies (no MXU rounding).
        y = jnp.sum(x[:, None, :] * selT[None, :, :], axis=-1)   # (C, S_out)
        # Option-A channel zero padding, written directly into the output tile.
        out_ref[...] = jnp.zeros_like(out_ref)
        out_ref[0, pad:pad + c_in, :] = y
    return kernel


# ---------------------------------------------------------------------------
# Wrapper: layout plumbing + the single pallas_call.
# ---------------------------------------------------------------------------
def lambda_layer_forward(x, planes=None):
    """LambdaLayer option-A shortcut:
       F.pad(x[:, :, ::2, ::2], (0,0,0,0, planes//4, planes//4), 'constant', 0)
    """
    n, c, h, w = x.shape
    if planes is None:
        planes = 2 * c                            # standard 16->32 / 32->64 use
    pad = planes // 4
    c_out = c + 2 * pad
    h_out, w_out = (h + 1) // 2, (w + 1) // 2
    s_in, s_out = h * w, h_out * w_out

    x_flat = x.astype(jnp.float32).reshape(n, c, s_in)   # lane dim = H*W
    selT = _selection_matrix_T(h, w)                      # (S_out, S_in)

    out = pl.pallas_call(
        _make_lambda_kernel(c, pad),
        out_shape=jax.ShapeDtypeStruct((n, c_out, s_out), jnp.float32),
        grid=(n,),
        in_specs=[
            pl.BlockSpec((1, c, s_in), lambda i: (i, 0, 0)),      # activation
            pl.BlockSpec((s_out, s_in), lambda i: (0, 0)),        # selection
        ],
        out_specs=pl.BlockSpec((1, c_out, s_out), lambda i: (i, 0, 0)),
        compiler_params=pltpu.CompilerParams(
            dimension_semantics=("parallel",),
            vmem_limit_bytes=16 * 1024 * 1024,
        ),
    )(x_flat, selT)

    return out.reshape(n, c_out, h_out, w_out)


# ---------------------------------------------------------------------------
if __name__ == "__main__":
    key = jax.random.PRNGKey(0)
    x = jax.random.normal(key, (2, 4, 16, 16), dtype=jnp.float32)

    fwd = jax.jit(lambda_layer_forward)
    out = fwd(x)
    jax.block_until_ready(out)

    # Pure-JAX reference of the option-A LambdaLayer.
    planes = 2 * x.shape[1]
    pad = planes // 4
    ref = jnp.pad(x[:, :, ::2, ::2], ((0, 0), (pad, pad), (0, 0), (0, 0)))

    assert out.shape == ref.shape, (out.shape, ref.shape)
    assert out.dtype == jnp.float32
    assert bool(jnp.allclose(out, ref, atol=1e-6, rtol=1e-6))
    assert bool(jnp.all(jnp.isfinite(out)))
    print("KERNEL_OK")
</pallas_src>

<mosaic_0001>
module attributes {stable_mosaic.version = 11 : i64} {
  func.func @kernel(%arg0: i32, %arg1: memref<1x4x256xf32, #tpu.memory_space<vmem>>, %arg2: memref<64x256xf32, #tpu.memory_space<vmem>>, %arg3: memref<1x8x64xf32, #tpu.memory_space<vmem>>) attributes {dimension_semantics = [#tpu.dimension_semantics<parallel>], iteration_bounds = array<i64: 2>, scalar_prefetch = 0 : i64, scratch_operands = 0 : i64, tpu.core_type = #tpu.core_type<tc>, window_params = [{transform_indices = @transform_0, window_bounds = array<i64: 1, 4, 256>}, {pipeline_mode = #tpu.pipeline_mode<synchronous>, transform_indices = @transform_1, window_bounds = array<i64: 64, 256>}, {transform_indices = @transform_2, window_bounds = array<i64: 1, 8, 64>}]} {
    %c0 = arith.constant 0 : index
    %c0_0 = arith.constant 0 : index
    %c0_1 = arith.constant 0 : index
    %0 = vector.load %arg1[%c0, %c0_0, %c0_1] : memref<1x4x256xf32, #tpu.memory_space<vmem>>, vector<1x4x256xf32>
    %1 = vector.shape_cast %0 : vector<1x4x256xf32> to vector<4x256xf32>
    %c0_2 = arith.constant 0 : index
    %c0_3 = arith.constant 0 : index
    %2 = vector.load %arg2[%c0_2, %c0_3] : memref<64x256xf32, #tpu.memory_space<vmem>>, vector<64x256xf32>
    %3 = vector.shape_cast %1 : vector<4x256xf32> to vector<4x1x256xf32>
    %4 = vector.shape_cast %2 : vector<64x256xf32> to vector<1x64x256xf32>
    %5 = vector.broadcast %3 : vector<4x1x256xf32> to vector<4x64x256xf32>
    %6 = vector.broadcast %4 : vector<1x64x256xf32> to vector<4x64x256xf32>
    %7 = arith.mulf %5, %6 : vector<4x64x256xf32>
    %cst = arith.constant dense<0.000000e+00> : vector<4x64xf32>
    %8 = vector.multi_reduction <add>, %7, %cst [2] : vector<4x64x256xf32> to vector<4x64xf32>
    %cst_4 = arith.constant 0.000000e+00 : f32
    %9 = vector.broadcast %cst_4 : f32 to vector<1x8x64xf32>
    %c0_5 = arith.constant 0 : index
    %c0_6 = arith.constant 0 : index
    %c0_7 = arith.constant 0 : index
    %10 = vector.load %arg3[%c0_5, %c0_6, %c0_7] : memref<1x8x64xf32, #tpu.memory_space<vmem>>, vector<1x8x64xf32>
    tpu.vector_store %arg3[%c0_5, %c0_6, %c0_7], %9 {strides = array<i32>} : memref<1x8x64xf32, #tpu.memory_space<vmem>>, vector<1x8x64xf32>,
    %c0_8 = arith.constant 0 : index
    %c2 = arith.constant 2 : index
    %c0_9 = arith.constant 0 : index
    %11 = vector.load %arg3[%c0_8, %c2, %c0_9] : memref<1x8x64xf32, #tpu.memory_space<vmem>>, vector<1x4x64xf32>
    %12 = vector.shape_cast %11 : vector<1x4x64xf32> to vector<4x64xf32>
    %13 = vector.shape_cast %8 : vector<4x64xf32> to vector<1x4x64xf32>
    tpu.vector_store %arg3[%c0_8, %c2, %c0_9], %13 {strides = array<i32>} : memref<1x8x64xf32, #tpu.memory_space<vmem>>, vector<1x4x64xf32>,
    return
  }
  func.func @transform_0(%arg0: i32) -> (i32, i32, i32) {
    %c0_i32 = arith.constant 0 : i32
    %c0_i32_0 = arith.constant 0 : i32
    %c0_i32_1 = arith.constant 0 : i32
    return %arg0, %c0_i32, %c0_i32_0 : i32, i32, i32
  }
  func.func @transform_1(%arg0: i32) -> (i32, i32) {
    %c0_i32 = arith.constant 0 : i32
    %c0_i32_0 = arith.constant 0 : i32
    %c0_i32_1 = arith.constant 0 : i32
    return %c0_i32, %c0_i32_0 : i32, i32
  }
  func.func @transform_2(%arg0: i32) -> (i32, i32, i32) {
    %c0_i32 = arith.constant 0 : i32
    %c0_i32_0 = arith.constant 0 : i32
    %c0_i32_1 = arith.constant 0 : i32
    return %arg0, %c0_i32, %c0_i32_0 : i32, i32, i32
  }
}

</mosaic_0001>

<bundles_post_ra>
// kernel: lambda_layer_forward.1
= control target key start
LH: loop header
LB: loop body
LE: loop exit
PB: predicated region body
PF: predicated region fallthrough
CT: control target
= control target key end

     0   :  { %s699_s9 = smov 0   ;;  %s998_s0 = inlined_call_operand.vmem [shape: f32[2,4,256], index: 0, kind: input, shape index: {}]   ;;  %s999_s1 = inlined_call_operand.vmem [shape: f32[64,256], index: 1, kind: input, shape index: {}]   ;;  %s1000_s2 = inlined_call_operand.vmem [shape: f32[2,8,64], index: 2, kind: output, shape index: {}]  }
   0x1 LB: > { %s652_s10 = sadd.s32 4294967295, %s680_s9   ;;  %p656_p0 = scmp.ge.s32.totalorder %s680_s9, 1  ;;  %s680_s9 = sphi %s699_s9, %s12_s9  }
   0x2   : > { %p112_p1 = scmp.lt.s32.totalorder %s680_s9, 3 }
   0x4   : > { %p113_p2 = pnand %p656_p0, %p112_p1 }
   0x5   : > { %p133_p3 = scmp.lt.s32.totalorder (!%p113_p2), %s652_s10, 1 }
   0x6   : > { %116 = sbr.rel (%p113_p2) target bundleno = 230 (0xe6), region = 28 }
   0xb   : > { %v171_v0 = vlaneseq  ;;  %v682_v1 = vmov 1966171168   ;;  %s1002_s10 = smov (!%p133_p3, %s652_s10), 1  ;;  %v143_v11 = vld [vmem:[%s999_s1] sm:$0xff]  ;;  %v144_v12 = vld [vmem:[%s999_s1 + $0x8] sm:$0xff]  ;;  %v145_v16 = vld [vmem:[%s999_s1 + $0x10] sm:$0xff] }
   0xc   : > { %v169_v2 = vunpack.c.l.s4 %v682_v1  ;;  %s663_s11 = sshll.u32 %s1002_s10, 3  ;;  %v146_v17 = vld [vmem:[%s999_s1 + $0x18] sm:$0xff]  ;;  %v748_v24 = vld [vmem:[%s999_s1 + $0x20] sm:$0xff]  ;;  %v753_v25 = vld [vmem:[%s999_s1 + $0x28] sm:$0xff]  ;;  %vm384_vm0 = vcmask 523264   ;;  %vm429_vm1 = vcmask 130112  }
   0xd   : > { %v710_v3 = vshrl.u32 %v171_v0, 7  ;;  %s137_s14 = scalar_lea.vmem %s998_s0, %s663_s11  ;;  %v768_v37 = vld [vmem:[%s999_s1 + $0x30] sm:$0xff]  ;;  %v773_v38 = vld [vmem:[%s999_s1 + $0x38] sm:$0xff]  ;;  %v151_v1 = vld [vmem:[%s999_s1 + $0x40] sm:$0xff]  ;;  %s878_s24 = scalar_lea.vmem %s1000_s2, %s663_s11  ;;  %vm436_vm2 = vcmask 195712   ;;  %vm443_vm3 = vcmask 261312  }
   0xe   : > { %v170_v4 = vunpack.c.0.s8 %v169_v2  ;;  %v660_v8 = vld.sshfl [vmem:[%s137_s14] sm:$0xff pattern:$0x75316420]  ;;  %v152_v2 = vld [vmem:[%s999_s1 + $0x48] sm:$0xff]  ;;  %vm450_vm4 = vcmask 326912   ;;  %vm457_vm5 = vcmask 392512  }
   0xf   : > { %v186_v6 = vsub.s32 0, %v710_v3  ;;  %v190_v7 = vsub.s32 1, %v710_v3  ;;  %v167_v10 = vcombine.high %v660_v8, %v660_v8  ;;  %vm464_vm6 = vcmask 458112  }
  0x10   : > { %v173_v5 = vsub.s32 %v170_v4, %v710_v3  ;;  %vm471_vm7 = vcmask 523712   ;;  %vm590_vm8 = vcmask 1041409   ;;  %vm592_vm9 = vcmask 1042434  }
  0x11   : > { %vm594_vm10 = vcmask 1043459   ;;  %vm597_vm11 = vcmask 519168  }
  0x12   : > { %v174_v9 = vrot.slane %v660_v8, %v173_v5  ;;  %v181_v15 = vrot.slane %v167_v10, %v173_v5 }
  0x14   : > { %v727_v13 = vrot.slane %v174_v9, %v186_v6  ;;  %v729_v14 = vrot.slane %v174_v9, %v190_v7  ;;  %v739_v20 = vrot.slane %v181_v15, %v186_v6  ;;  %v741_v21 = vrot.slane %v181_v15, %v190_v7 }
  0x15   : > { %v182_v26 = vcombine.high %v174_v9, %v174_v9  ;;  %v183_v49 = vcombine.high %v181_v15, %v181_v15 }
  0x16   : > { %v224_v18 = vmul.f32 %v727_v13, %v143_v11  ;;  %v225_v19 = vmul.f32 %v729_v14, %v144_v12  ;;  %v226_v22 = vmul.f32 %v727_v13, %v145_v16  ;;  %v227_v23 = vmul.f32 %v729_v14, %v146_v17 }
  0x17   : > { %v240_v28 = vmul.f32 %v739_v20, %v143_v11  ;;  %v241_v29 = vmul.f32 %v741_v21, %v144_v12  ;;  %v242_v30 = vmul.f32 %v739_v20, %v145_v16  ;;  %v243_v31 = vmul.f32 %v741_v21, %v146_v17 }
  0x18   : > { %v288_v27 = vadd.f32 %v225_v19, %v224_v18  ;;  %v291_v33 = vadd.f32 %v227_v23, %v226_v22  ;;  %v228_v34 = vmul.f32 %v727_v13, %v748_v24  ;;  %v229_v35 = vmul.f32 %v729_v14, %v753_v25  ;;  %v154_v19 = vld [vmem:[%s999_s1 + $0x58] sm:$0xff] }
  0x19   : > { %v312_v32 = vadd.f32 %v241_v29, %v240_v28  ;;  %v244_v36 = vmul.f32 %v739_v20, %v748_v24  ;;  %v315_v39 = vadd.f32 %v243_v31, %v242_v30  ;;  %v245_v40 = vmul.f32 %v741_v21, %v753_v25 }
  0x1a   : > { %289 = vadd.xlane.f32.xlu0 %v288_v27  ;;  %v777_v41 = vrot.slane %v182_v26, %v186_v6  ;;  %v779_v42 = vrot.slane %v182_v26, %v190_v7  ;;  %v294_v43 = vadd.f32 %v229_v35, %v228_v34  ;;  %v230_v44 = vmul.f32 %v727_v13, %v768_v37  ;;  %v156_v35 = vld [vmem:[%s999_s1 + $0x68] sm:$0xff] }
  0x1b   : > { %313 = vadd.xlane.f32.xlu1 %v312_v32  ;;  %v231_v45 = vmul.f32 %v729_v14, %v773_v38  ;;  %v318_v46 = vadd.f32 %v245_v40, %v244_v36  ;;  %v246_v53 = vmul.f32 %v739_v20, %v768_v37  ;;  %v247_v55 = vmul.f32 %v741_v21, %v773_v38 }
  0x1c   : > { %v258_v47 = vmul.f32 %v777_v41, %v145_v16  ;;  %v259_v48 = vmul.f32 %v779_v42, %v146_v17  ;;  %v256_v51 = vmul.f32 %v777_v41, %v143_v11  ;;  %v257_v52 = vmul.f32 %v779_v42, %v144_v12 }
  0x1d   : > { %v297_v50 = vadd.f32 %v231_v45, %v230_v44  ;;  %v793_v56 = vrot.slane %v183_v49, %v186_v6  ;;  %v795_v57 = vrot.slane %v183_v49, %v190_v7  ;;  %v260_v59 = vmul.f32 %v777_v41, %v748_v24 }
  0x1e   : > { %292 = vadd.xlane.f32.xlu0 %v291_v33  ;;  %v339_v54 = vadd.f32 %v259_v48, %v258_v47  ;;  %v336_v58 = vadd.f32 %v257_v52, %v256_v51  ;;  %v261_v60 = vmul.f32 %v779_v42, %v753_v25  ;;  %v321_v61 = vadd.f32 %v247_v55, %v246_v53  ;;  %v158_v51 = vld [vmem:[%s999_s1 + $0x78] sm:$0xff] }
  0x1f   : > { %316 = vadd.xlane.f32.xlu1 %v315_v39  ;;  %v272_v62 = vmul.f32 %v793_v56, %v143_v11  ;;  %v273_v63 = vmul.f32 %v795_v57, %v144_v12  ;;  %v274_v5 = vmul.f32 %v793_v56, %v145_v16  ;;  %v275_v6 = vmul.f32 %v795_v57, %v146_v17  ;;  %v153_v17 = vld [vmem:[%s999_s1 + $0x50] sm:$0xff] }
  0x20   : > { %v342_v4 = vadd.f32 %v261_v60, %v260_v59  ;;  %v232_v8 = vmul.f32 %v727_v13, %v151_v1  ;;  %v233_v9 = vmul.f32 %v729_v14, %v152_v2  ;;  %v248_v11 = vmul.f32 %v739_v20, %v151_v1 }
  0x21   : > { %v360_v7 = vadd.f32 %v273_v63, %v272_v62  ;;  %v363_v10 = vadd.f32 %v275_v6, %v274_v5  ;;  %v249_v12 = vmul.f32 %v741_v21, %v152_v2  ;;  %v262_v18 = vmul.f32 %v777_v41, %v768_v37 }
  0x22   : > { %295 = vadd.xlane.f32.xlu0 %v294_v43  ;;  %v300_v15 = vadd.f32 %v233_v9, %v232_v8  ;;  %v263_v16 = vmul.f32 %v779_v42, %v773_v38  ;;  %v276_v23 = vmul.f32 %v793_v56, %v748_v24  ;;  %v277_v26 = vmul.f32 %v795_v57, %v753_v25  ;;  %v155_v25 = vld [vmem:[%s999_s1 + $0x60] sm:$0xff] }
  0x23   : > { %319 = vadd.xlane.f32.xlu1 %v318_v46  ;;  %v324_v22 = vadd.f32 %v249_v12, %v248_v11  ;;  %v234_v28 = vmul.f32 %v727_v13, %v153_v17  ;;  %v235_v29 = vmul.f32 %v729_v14, %v154_v19  ;;  %v250_v31 = vmul.f32 %v739_v20, %v153_v17 }
  0x24   : > { %v345_v27 = vadd.f32 %v263_v16, %v262_v18  ;;  %v366_v30 = vadd.f32 %v277_v26, %v276_v23  ;;  %v251_v32 = vmul.f32 %v741_v21, %v154_v19  ;;  %v264_v34 = vmul.f32 %v777_v41, %v151_v1 }
  0x25   : > { %v303_v33 = vadd.f32 %v235_v29, %v234_v28  ;;  %v265_v24 = vmul.f32 %v779_v42, %v152_v2  ;;  %v278_v39 = vmul.f32 %v793_v56, %v768_v37  ;;  %v279_v40 = vmul.f32 %v795_v57, %v773_v38  ;;  %v157_v38 = vld [vmem:[%s999_s1 + $0x70] sm:$0xff] }
  0x26   : > { %298 = vadd.xlane.f32.xlu0 %v297_v50  ;;  %v327_v36 = vadd.f32 %v251_v32, %v250_v31  ;;  %v236_v44 = vmul.f32 %v727_v13, %v155_v25  ;;  %v237_v45 = vmul.f32 %v729_v14, %v156_v35  ;;  %v252_v47 = vmul.f32 %v739_v20, %v155_v25 }
  0x27   : > { %340 = vadd.xlane.f32.xlu1 %v339_v54  ;;  %v348_v43 = vadd.f32 %v265_v24, %v264_v34  ;;  %v369_v46 = vadd.f32 %v279_v40, %v278_v39  ;;  %v253_v48 = vmul.f32 %v741_v21, %v156_v35  ;;  %v266_v50 = vmul.f32 %v777_v41, %v153_v17 }
  0x28   : > { %v306_v49 = vadd.f32 %v237_v45, %v236_v44  ;;  %v267_v37 = vmul.f32 %v779_v42, %v154_v19  ;;  %v280_v53 = vmul.f32 %v793_v56, %v151_v1  ;;  %v281_v54 = vmul.f32 %v795_v57, %v152_v2 }
  0x29   : > { %v330_v52 = vadd.f32 %v253_v48, %v252_v47  ;;  %v239_v59 = vmul.f32 %v729_v14, %v158_v51  ;;  %v255_v62 = vmul.f32 %v741_v21, %v158_v51  ;;  %v269_v1 = vmul.f32 %v779_v42, %v156_v35 }
  0x2a   : > { %337 = vadd.xlane.f32.xlu0 %v336_v58  ;;  %v351_v55 = vadd.f32 %v267_v37, %v266_v50  ;;  %v238_v58 = vmul.f32 %v727_v13, %v157_v38  ;;  %v372_v60 = vadd.f32 %v281_v54, %v280_v53  ;;  %v282_v5 = vmul.f32 %v793_v56, %v153_v17 }
  0x2b   : > { %322 = vadd.xlane.f32.xlu1 %v321_v61  ;;  %v254_v61 = vmul.f32 %v739_v20, %v157_v38  ;;  %v283_v13 = vmul.f32 %v795_v57, %v154_v19  ;;  %v270_v6 = vmul.f32 %v777_v41, %v157_v38  ;;  %v271_v20 = vmul.f32 %v779_v42, %v158_v51 }
  0x2c   : > { %v309_v63 = vadd.f32 %v239_v59, %v238_v58  ;;  %v285_v8 = vmul.f32 %v795_v57, %v156_v35  ;;  %v287_v11 = vmul.f32 %v795_v57, %v158_v51  ;;  %v419_v34 = vand.u32 127, %v171_v0 }
  0x2d   : > { %v333_v2 = vadd.f32 %v255_v62, %v254_v61  ;;  %v375_v21 = vadd.f32 %v283_v13, %v282_v5  ;;  %v357_v9 = vadd.f32 %v271_v20, %v270_v6 }
  0x2e   : > { %343 = vadd.xlane.f32.xlu0 %v342_v4  ;;  %v268_v4 = vmul.f32 %v777_v41, %v155_v25  ;;  %v683_v41 = vmov 0.0   ;;  %v424_v35 = vadd.s32 4294967288, %v419_v34  ;;  %v431_v39 = vadd.s32 4294967280, %v419_v34 }
  0x2f   : > { %361 = vadd.xlane.f32.xlu1 %v360_v7  ;;  %v284_v7 = vmul.f32 %v793_v56, %v155_v25  ;;  %385 = vst.msk [vmem:[%s878_s24] sm:$0xff] %vm384_vm0, %v683_v41  ;;  %v452_v47 = vadd.s32 4294967256, %v419_v34  ;;  %v422_v48 = vsub.s32 %v419_v34, %v710_v3  ;;  %v466_v61 = vadd.s32 4294967240, %v419_v34 }
  0x30   : > { %v354_v14 = vadd.f32 %v269_v1, %v268_v4  ;;  %v427_v44 = vsub.s32 %v424_v35, %v710_v3  ;;  %v915_v0 = vsub.s32 %v431_v39, %v710_v3 }
  0x31   : > { %v378_v12 = vadd.f32 %v285_v8, %v284_v7  ;;  %v928_v54 = vsub.s32 %v452_v47, %v710_v3 }
  0x32   : > { %364 = vadd.xlane.f32.xlu0 %v363_v10  ;;  %v286_v10 = vmul.f32 %v793_v56, %v157_v38  ;;  %v459_v38 = vadd.s32 4294967248, %v419_v34 }
  0x33   : > { %301 = vadd.xlane.f32.xlu1 %v300_v15 }
  0x34   : > { %v381_v15 = vadd.f32 %v287_v11, %v286_v10  ;;  %v462_v13 = vsub.s32 %v459_v38, %v710_v3  ;;  %v469_v10 = vsub.s32 %v466_v61, %v710_v3 }
  0x36   : > { %325 = vadd.xlane.f32.xlu0 %v324_v22 }
  0x37   : > { %346 = vadd.xlane.f32.xlu1 %v345_v27 }
  0x3a   : > { %367 = vadd.xlane.f32.xlu0 %v366_v30 }
  0x3b   : > { %304 = vadd.xlane.f32.xlu1 %v303_v33 }
  0x3e   : > { %328 = vadd.xlane.f32.xlu0 %v327_v36 }
  0x3f   : > { %349 = vadd.xlane.f32.xlu1 %v348_v43  ;;  %v438_v43 = vadd.s32 4294967272, %v419_v34 }
  0x41   : > { %v920_v50 = vsub.s32 %v438_v43, %v710_v3 }
  0x42   : > { %370 = vadd.xlane.f32.xlu0 %v369_v46  ;;  %v445_v46 = vadd.s32 4294967264, %v419_v34 }
  0x43   : > { %307 = vadd.xlane.f32.xlu1 %v306_v49 }
  0x44   : > { %v925_v53 = vsub.s32 %v445_v46, %v710_v3 }
  0x46   : > { %331 = vadd.xlane.f32.xlu0 %v330_v52 }
  0x47   : > { %352 = vadd.xlane.f32.xlu1 %v351_v55 }
  0x4a   : > { %373 = vadd.xlane.f32.xlu0 %v372_v60 }
  0x4b   : > { %310 = vadd.xlane.f32.xlu1 %v309_v63 }
  0x4e   : > { %334 = vadd.xlane.f32.xlu0 %v333_v2 }
  0x4f   : > { %355 = vadd.xlane.f32.xlu1 %v354_v14 }
  0x52   : > { %376 = vadd.xlane.f32.xlu0 %v375_v21 }
  0x53   : > { %358 = vadd.xlane.f32.xlu1 %v357_v9 }
  0x56   : > { %379 = vadd.xlane.f32.xlu0 %v378_v12 }
  0x57   : > { %382 = vadd.xlane.f32.xlu1 %v381_v15 }
  0xa3   : > { %v290_v42 = vpop.xlane.xlu0 %289 }
  0xa4   : > { %v314_v56 = vpop.xlane.xlu1 %313  ;;  %v423_v55 = vrot.slane %v290_v42, %v422_v48 }
  0xa5   : > { %v476_v62 = vrot.slane %v314_v56, %v422_v48 }
  0xa7   : > { %v293_v18 = vpop.xlane.xlu0 %292 }
  0xa8   : > { %v317_v57 = vpop.xlane.xlu1 %316  ;;  %v428_v37 = vrot.slane %v293_v18, %v427_v44 }
  0xa9   : > { %v480_v52 = vrot.slane %v317_v57, %v427_v44 }
  0xaa   : > { %v430_v1 = vsel %vm429_vm1, %v428_v37, %v423_v55 }
  0xab   : > { %v296_v16 = vpop.xlane.xlu0 %295  ;;  %v481_v6 = vsel %vm429_vm1, %v480_v52, %v476_v62 }
  0xac   : > { %v320_v17 = vpop.xlane.xlu1 %319  ;;  %v435_v58 = vrot.slane %v296_v16, %v915_v0 }
  0xad   : > { %v485_v59 = vrot.slane %v320_v17, %v915_v0 }
  0xae   : > { %v437_v8 = vsel %vm436_vm2, %v435_v58, %v430_v1 }
  0xaf   : > { %v881_v19 = vpop.xlane.xlu0 %298  ;;  %v486_v9 = vsel %vm436_vm2, %v485_v59, %v481_v6 }
  0xb0   : > { %v883_v22 = vpop.xlane.xlu1 %340  ;;  %v442_v63 = vrot.slane %v881_v19, %v920_v50 }
  0xb1   : > { %v519_v20 = vrot.slane %v883_v22, %v427_v44 }
  0xb2   : > { %v444_v12 = vsel %vm443_vm3, %v442_v63, %v437_v8 }
  0xb3   : > { %v338_v23 = vpop.xlane.xlu0 %337 }
  0xb4   : > { %v885_v26 = vpop.xlane.xlu1 %322  ;;  %v515_v4 = vrot.slane %v338_v23, %v422_v48 }
  0xb5   : > { %v490_v2 = vrot.slane %v885_v26, %v920_v50 }
  0xb6   : > { %v520_v15 = vsel %vm429_vm1, %v519_v20, %v515_v4 }
  0xb7   : > { %v887_v27 = vpop.xlane.xlu0 %343  ;;  %v491_v56 = vsel %vm443_vm3, %v490_v2, %v486_v9 }
  0xb8   : > { %v889_v28 = vpop.xlane.xlu1 %361  ;;  %v524_v5 = vrot.slane %v887_v27, %v915_v0 }
  0xb9   : > { %v554_v41 = vrot.slane %v889_v28, %v422_v48 }
  0xba   : > { %v525_v18 = vsel %vm436_vm2, %v524_v5, %v520_v15 }
  0xbb   : > { %v891_v29 = vpop.xlane.xlu0 %364 }
  0xbc   : > { %v893_v30 = vpop.xlane.xlu1 %301  ;;  %v558_v21 = vrot.slane %v891_v29, %v427_v44 }
  0xbd   : > { %v449_v7 = vrot.slane %v893_v30, %v925_v53 }
  0xbe   : > { %v559_v17 = vsel %vm429_vm1, %v558_v21, %v554_v41 }
  0xbf   : > { %v895_v31 = vpop.xlane.xlu0 %325  ;;  %v451_v19 = vsel %vm450_vm4, %v449_v7, %v444_v12 }
  0xc0   : > { %v897_v32 = vpop.xlane.xlu1 %346  ;;  %v495_v42 = vrot.slane %v895_v31, %v925_v53 }
  0xc1   : > { %v529_v57 = vrot.slane %v897_v32, %v920_v50 }
  0xc2   : > { %v496_v31 = vsel %vm450_vm4, %v495_v42, %v491_v56 }
  0xc3   : > { %v899_v33 = vpop.xlane.xlu0 %367 }
  0xc4   : > { %v902_v24 = vpop.xlane.xlu1 %304  ;;  %v563_v3 = vrot.slane %v899_v33, %v915_v0 }
  0xc5   : > { %v456_v26 = vrot.slane %v902_v24, %v928_v54 }
  0xc6   : > { %v564_v35 = vsel %vm436_vm2, %v563_v3, %v559_v17 }
  0xc7   : > { %v904_v25 = vpop.xlane.xlu0 %328  ;;  %v458_v47 = vsel %vm457_vm5, %v456_v26, %v451_v19 }
  0xc8   : > { %v906_v36 = vpop.xlane.xlu1 %349  ;;  %v500_v22 = vrot.slane %v904_v25, %v928_v54  ;;  %v530_v25 = vsel %vm443_vm3, %v529_v57, %v525_v18 }
  0xc9   : > { %v534_v23 = vrot.slane %v906_v36, %v925_v53 }
  0xcb   : > { %v908_v40 = vpop.xlane.xlu0 %370  ;;  %v535_v43 = vsel %vm450_vm4, %v534_v23, %v530_v25 }
  0xcc   : > { %v911_v45 = vpop.xlane.xlu1 %307  ;;  %v568_v27 = vrot.slane %v908_v40, %v920_v50  ;;  %v501_v40 = vsel %vm457_vm5, %v500_v22, %v496_v31 }
  0xcd   : > { %v463_v24 = vrot.slane %v911_v45, %v462_v13 }
  0xce   : > { %v569_v48 = vsel %vm443_vm3, %v568_v27, %v564_v35 }
  0xcf   : > { %v917_v49 = vpop.xlane.xlu0 %331  ;;  %v465_v52 = vsel %vm464_vm6, %v463_v24, %v458_v47 }
  0xd0   : > { %v922_v51 = vpop.xlane.xlu1 %352  ;;  %v505_v28 = vrot.slane %v917_v49, %v462_v13 }
  0xd1   : > { %v539_v29 = vrot.slane %v922_v51, %v928_v54 }
  0xd2   : > { %v506_v0 = vsel %vm464_vm6, %v505_v28, %v501_v40 }
  0xd3   : > { %v374_v60 = vpop.xlane.xlu0 %373  ;;  %v540_v49 = vsel %vm457_vm5, %v539_v29, %v535_v43 }
  0xd4   : > { %v311_v14 = vpop.xlane.xlu1 %310  ;;  %v573_v32 = vrot.slane %v374_v60, %v925_v53 }
  0xd5   : > { %v470_v44 = vrot.slane %v311_v14, %v469_v10 }
  0xd6   : > { %v574_v45 = vsel %vm450_vm4, %v573_v32, %v569_v48 }
  0xd7   : > { %v335_v11 = vpop.xlane.xlu0 %334  ;;  %v472_v58 = vsel %vm471_vm7, %v470_v44, %v465_v52 }
  0xd8   : > { %v356_v16 = vpop.xlane.xlu1 %355  ;;  %v510_v33 = vrot.slane %v335_v11, %v469_v10 }
  0xd9   : > { %v544_v34 = vrot.slane %v356_v16, %v462_v13 }
  0xda   : > { %v511_v37 = vsel %vm471_vm7, %v510_v33, %v506_v0 }
  0xdb   : > { %v377_v30 = vpop.xlane.xlu0 %376  ;;  %v545_v38 = vsel %vm464_vm6, %v544_v34, %v540_v49  ;;  %v591_v61 = vsel %vm590_vm8, %v511_v37, %v472_v58 }
  0xdc   : > { %v578_v36 = vrot.slane %v377_v30, %v928_v54  ;;  %v359_v39 = vpop.xlane.xlu1 %358 }
  0xdd   : > { %v549_v46 = vrot.slane %v359_v39, %v469_v10 }
  0xde   : > { %v579_v53 = vsel %vm457_vm5, %v578_v36, %v574_v45 }
  0xdf   : > { %v380_v50 = vpop.xlane.xlu0 %379  ;;  %v550_v54 = vsel %vm471_vm7, %v549_v46, %v545_v38 }
  0xe0   : > { %v583_v51 = vrot.slane %v380_v50, %v462_v13  ;;  %v383_v55 = vpop.xlane.xlu1 %382  ;;  %v593_v62 = vsel %vm592_vm9, %v550_v54, %v591_v61 }
  0xe1   : > { %v588_v60 = vrot.slane %v383_v55, %v469_v10 }
  0xe2   : > { %v584_v59 = vsel %vm464_vm6, %v583_v51, %v579_v53 }
  0xe3   : > { %v589_v63 = vsel %vm471_vm7, %v588_v60, %v584_v59 }
  0xe4   : > { %v595_v4 = vsel %vm594_vm10, %v589_v63, %v593_v62 }
  0xe5   : > { %598 = vst.msk [vmem:[%s878_s24 + $0x2] sm:$0xf] %vm597_vm11, %v595_v4 }
  0xe6 PF: > { %s12_s9 = sadd.s32 1, %s680_s9  }
  0xe7   : > { %p9_p4 = scmp.ge.s32.totalorder %s12_s9, 4  }
  0xe9   :  { %11 = sbr.rel (!%p9_p4) target bundleno = 1 (0x1), region = 58 }

</bundles_post_ra>
